<compile_context>
chip_gen: v7x
topology: tpu7x:2x2x1
jax: 0.10.0
libtpu: 0.0.40
codegen_flags: <defaults>
</compile_context>

<pallas_src>
import functools

import jax
import jax.numpy as jnp
from jax import lax
from jax.experimental import pallas as pl
from jax.experimental.pallas import tpu as pltpu

EPS = 1e-5          # InstanceNorm2d default eps
NEG_SLOPE = 0.2     # LeakyReLU slope
K = 3               # conv kernel size


def conv_block_kernel(patches_ref, w_ref, b_ref, gamma_ref, beta_ref, proj_ref,
                      out_ref, *, c_out):
    # One grid step processes a chunk of `nb` samples (nb*P lanes).
    patches = patches_ref[0]                                   # [CKK, M]

    # Single fused MXU matmul: main 3x3 conv and (avgpool -> 1x1) skip branch.
    fused = jnp.dot(w_ref[...], patches,
                    preferred_element_type=jnp.float32) + b_ref[...]   # [2*C_out, M]
    conv = fused[:c_out, :]                                    # [C_out, M] main branch
    skip = fused[c_out:, :]                                    # [C_out, M] skip branch

    # InstanceNorm2d(affine): per-(sample, channel) biased stats over spatial P.
    # proj is the block-diagonal averaging matrix, so conv @ proj broadcasts the
    # per-sample spatial mean back over each sample's P lanes (all on the MXU).
    proj = proj_ref[...]
    mean = jnp.dot(conv, proj, preferred_element_type=jnp.float32)       # [C_out, M]
    centered = conv - mean
    var = jnp.dot(centered * centered, proj,
                  preferred_element_type=jnp.float32)                    # [C_out, M]
    norm = centered * lax.rsqrt(var + EPS)
    norm = norm * gamma_ref[...] + beta_ref[...]

    # LeakyReLU(0.2) + residual add; lane-dense store (last dim = nb*P >= 128).
    act = jnp.where(norm >= 0, norm, NEG_SLOPE * norm)
    out_ref[0] = act + skip


def conv2d_block_mnist(x_nchw, wconv, bconv, gamma, beta, w1, b1, nb=None):
    """x_nchw: [N, C_in, H, W] float32. Returns [N, C_out, H//2, W//2]."""
    N, C_in, H, W = x_nchw.shape
    assert H % 2 == 0 and W % 2 == 0, "stride-2 conv / 2x2 pool need even H, W"
    C_out = wconv.shape[0]
    Ho, Wo = H // 2, W // 2
    P = Ho * Wo
    CKK = C_in * K * K

    # Samples per grid step: whole batch when small; cap nb*P so the proj matrix
    # and per-step VMEM stay tiny (proj is (nb*P)^2 * 4 B).
    if nb is None:
        nb = N
        while nb * P > 1024 and nb % 2 == 0:
            nb //= 2
    assert N % nb == 0
    G = N // nb
    M = nb * P                      # lane width of the per-step work slab

    # ---- glue: im2col of the 3x3/stride-2/pad-1 conv (NHWC) ----
    # TODO(synk): for large H,W read x_pad directly in-kernel (9 shifted matmuls)
    # instead of materializing the 9x-larger im2col slab in HBM.
    x = jnp.transpose(x_nchw, (0, 2, 3, 1))                    # NHWC
    x_pad = jnp.pad(x, ((0, 0), (1, 1), (1, 1), (0, 0)))
    taps = []
    for kh in range(K):
        for kw in range(K):
            taps.append(x_pad[:, kh:kh + 2 * Ho:2, kw:kw + 2 * Wo:2, :])
    patches = jnp.stack(taps, axis=3).reshape(N, P, CKK)       # rows: (kh,kw,c_in)
    # chunked + transposed: [G, CKK, nb*P]  (lane dim = samples*spatial)
    patches_t = jnp.transpose(patches.reshape(G, M, CKK), (0, 2, 1))

    # ---- fused weights ----
    # main conv: torch [C_out, C_in, kh, kw] -> [(kh,kw,c_in), C_out]
    w_main = jnp.transpose(wconv, (2, 3, 1, 0)).reshape(CKK, C_out)
    # skip branch: AvgPool2d(2,2) taps == im2col taps (kh,kw) in {1,2}x{1,2},
    # so 0.25 * w1 placed in those rows reproduces avgpool -> 1x1 conv exactly.
    w1_mat = jnp.transpose(w1, (2, 3, 1, 0)).reshape(C_in, C_out)
    w_skip = jnp.zeros((K, K, C_in, C_out), dtype=w1_mat.dtype)
    w_skip = w_skip.at[1:3, 1:3, :, :].set(0.25 * w1_mat[None, None])
    w_skip = w_skip.reshape(CKK, C_out)
    w_fused_t = jnp.concatenate([w_main, w_skip], axis=1).T    # [2*C_out, CKK]
    b_fused = jnp.concatenate([bconv, b1]).reshape(2 * C_out, 1)

    # block-diagonal per-sample spatial averaging matrix [M, M]
    seg = jnp.repeat(jnp.arange(nb), P)
    proj = (seg[:, None] == seg[None, :]).astype(jnp.float32) / P

    grid_spec = pltpu.PrefetchScalarGridSpec(
        num_scalar_prefetch=0,
        grid=(G,),
        in_specs=[
            pl.BlockSpec((1, CKK, M), lambda g: (g, 0, 0)),
            pl.BlockSpec((2 * C_out, CKK), lambda g: (0, 0)),
            pl.BlockSpec((2 * C_out, 1), lambda g: (0, 0)),
            pl.BlockSpec((C_out, 1), lambda g: (0, 0)),
            pl.BlockSpec((C_out, 1), lambda g: (0, 0)),
            pl.BlockSpec((M, M), lambda g: (0, 0)),
        ],
        out_specs=pl.BlockSpec((1, C_out, M), lambda g: (g, 0, 0)),
    )

    out_t = pl.pallas_call(
        functools.partial(conv_block_kernel, c_out=C_out),
        out_shape=jax.ShapeDtypeStruct((G, C_out, M), jnp.float32),
        grid_spec=grid_spec,
        compiler_params=pltpu.CompilerParams(
            dimension_semantics=("parallel",)),
    )(patches_t, w_fused_t, b_fused,
      gamma.reshape(C_out, 1), beta.reshape(C_out, 1), proj)

    # [G, C_out, nb*P] -> [N, C_out, Ho, Wo]  (layout plumbing)
    out = out_t.reshape(G, C_out, nb, Ho, Wo)
    out = jnp.transpose(out, (0, 2, 1, 3, 4)).reshape(N, C_out, Ho, Wo)
    return out


def reference(x, wconv, bconv, gamma, beta, w1, b1):
    """Pure-JAX reference matching PyTorch semantics (NCHW)."""
    conv = lax.conv_general_dilated(x, wconv, (2, 2), ((1, 1), (1, 1)),
                                    dimension_numbers=('NCHW', 'OIHW', 'NCHW'))
    conv = conv + bconv[None, :, None, None]
    mean = conv.mean(axis=(2, 3), keepdims=True)
    var = ((conv - mean) ** 2).mean(axis=(2, 3), keepdims=True)
    norm = (conv - mean) / jnp.sqrt(var + EPS)
    norm = norm * gamma[None, :, None, None] + beta[None, :, None, None]
    act = jnp.where(norm >= 0, norm, NEG_SLOPE * norm)
    xd = (x[:, :, 0::2, 0::2] + x[:, :, 0::2, 1::2]
          + x[:, :, 1::2, 0::2] + x[:, :, 1::2, 1::2]) * 0.25
    skip = lax.conv_general_dilated(xd, w1, (1, 1), ((0, 0), (0, 0)),
                                    dimension_numbers=('NCHW', 'OIHW', 'NCHW'))
    skip = skip + b1[None, :, None, None]
    return act + skip


if __name__ == "__main__":
    N, C_in, C_out, H, W = 2, 4, 8, 16, 16

    key = jax.random.PRNGKey(0)
    kx, kw, kb, kg, kbe, kw1, kb1 = jax.random.split(key, 7)

    x = jax.random.normal(kx, (N, C_in, H, W), dtype=jnp.float32)

    # deterministic parameter init (shapes from the module's __init__)
    wconv = 0.1 * jax.random.normal(kw, (C_out, C_in, K, K), dtype=jnp.float32)
    bconv = 0.1 * jax.random.normal(kb, (C_out,), dtype=jnp.float32)
    gamma = 1.0 + 0.1 * jax.random.normal(kg, (C_out,), dtype=jnp.float32)
    beta = 0.1 * jax.random.normal(kbe, (C_out,), dtype=jnp.float32)
    w1 = 0.1 * jax.random.normal(kw1, (C_out, C_in, 1, 1), dtype=jnp.float32)
    b1 = 0.1 * jax.random.normal(kb1, (C_out,), dtype=jnp.float32)

    out = conv2d_block_mnist(x, wconv, bconv, gamma, beta, w1, b1)
    out = jax.block_until_ready(out)

    ref = jax.block_until_ready(reference(x, wconv, bconv, gamma, beta, w1, b1))
    assert out.shape == (N, C_out, H // 2, W // 2), out.shape
    assert jnp.allclose(out, ref, atol=1e-4, rtol=1e-4), float(jnp.max(jnp.abs(out - ref)))

    print("KERNEL_OK")
</pallas_src>

<mosaic_0001>
module attributes {stable_mosaic.version = 11 : i64} {
  func.func @conv_block_kernel(%arg0: i32, %arg1: memref<1x36x128xf32, #tpu.memory_space<vmem>>, %arg2: memref<16x36xf32, #tpu.memory_space<vmem>>, %arg3: memref<16x1xf32, #tpu.memory_space<vmem>>, %arg4: memref<8x1xf32, #tpu.memory_space<vmem>>, %arg5: memref<8x1xf32, #tpu.memory_space<vmem>>, %arg6: memref<128x128xf32, #tpu.memory_space<vmem>>, %arg7: memref<1x8x128xf32, #tpu.memory_space<vmem>>) attributes {dimension_semantics = [#tpu.dimension_semantics<parallel>], iteration_bounds = array<i64: 1>, scalar_prefetch = 0 : i64, scratch_operands = 0 : i64, tpu.core_type = #tpu.core_type<tc>, window_params = [{transform_indices = @transform_0, window_bounds = array<i64: 1, 36, 128>}, {pipeline_mode = #tpu.pipeline_mode<synchronous>, transform_indices = @transform_1, window_bounds = array<i64: 16, 36>}, {pipeline_mode = #tpu.pipeline_mode<synchronous>, transform_indices = @transform_2, window_bounds = array<i64: 16, 1>}, {pipeline_mode = #tpu.pipeline_mode<synchronous>, transform_indices = @transform_3, window_bounds = array<i64: 8, 1>}, {pipeline_mode = #tpu.pipeline_mode<synchronous>, transform_indices = @transform_4, window_bounds = array<i64: 8, 1>}, {pipeline_mode = #tpu.pipeline_mode<synchronous>, transform_indices = @transform_5, window_bounds = array<i64: 128, 128>}, {transform_indices = @transform_6, window_bounds = array<i64: 1, 8, 128>}]} {
    %c0 = arith.constant 0 : index
    %c0_0 = arith.constant 0 : index
    %c0_1 = arith.constant 0 : index
    %0 = vector.load %arg1[%c0, %c0_0, %c0_1] : memref<1x36x128xf32, #tpu.memory_space<vmem>>, vector<1x36x128xf32>
    %1 = vector.shape_cast %0 : vector<1x36x128xf32> to vector<36x128xf32>
    %c0_2 = arith.constant 0 : index
    %c0_3 = arith.constant 0 : index
    %2 = vector.load %arg2[%c0_2, %c0_3] : memref<16x36xf32, #tpu.memory_space<vmem>>, vector<16x36xf32>
    %cst = arith.constant dense<0.000000e+00> : vector<16x128xf32>
    %3 = tpu.matmul %2, %1, %cst {dimension_numbers = #tpu.dot_dimension_numbers<[1], [0], [0], [1], [0, 0, 1, 1], [], []>} : vector<16x36xf32>, vector<36x128xf32>, vector<16x128xf32> -> vector<16x128xf32>
    %c0_4 = arith.constant 0 : index
    %c0_5 = arith.constant 0 : index
    %4 = vector.load %arg3[%c0_4, %c0_5] : memref<16x1xf32, #tpu.memory_space<vmem>>, vector<16x1xf32>
    %5 = vector.broadcast %4 : vector<16x1xf32> to vector<16x128xf32>
    %6 = arith.addf %3, %5 : vector<16x128xf32>
    %7 = vector.extract_strided_slice %6 {offsets = [0, 0], sizes = [8, 128], strides = [1, 1]} : vector<16x128xf32> to vector<8x128xf32>
    %8 = vector.extract_strided_slice %6 {offsets = [8, 0], sizes = [8, 128], strides = [1, 1]} : vector<16x128xf32> to vector<8x128xf32>
    %c0_6 = arith.constant 0 : index
    %c0_7 = arith.constant 0 : index
    %9 = vector.load %arg6[%c0_6, %c0_7] : memref<128x128xf32, #tpu.memory_space<vmem>>, vector<128x128xf32>
    %cst_8 = arith.constant dense<0.000000e+00> : vector<8x128xf32>
    %10 = tpu.matmul %7, %9, %cst_8 {dimension_numbers = #tpu.dot_dimension_numbers<[1], [0], [0], [1], [0, 0, 1, 1], [], []>} : vector<8x128xf32>, vector<128x128xf32>, vector<8x128xf32> -> vector<8x128xf32>
    %11 = arith.subf %7, %10 : vector<8x128xf32>
    %12 = arith.mulf %11, %11 : vector<8x128xf32>
    %cst_9 = arith.constant dense<0.000000e+00> : vector<8x128xf32>
    %13 = tpu.matmul %12, %9, %cst_9 {dimension_numbers = #tpu.dot_dimension_numbers<[1], [0], [0], [1], [0, 0, 1, 1], [], []>} : vector<8x128xf32>, vector<128x128xf32>, vector<8x128xf32> -> vector<8x128xf32>
    %cst_10 = arith.constant 9.99999974E-6 : f32
    %14 = vector.broadcast %cst_10 : f32 to vector<8x128xf32>
    %15 = arith.addf %13, %14 : vector<8x128xf32>
    %16 = math.rsqrt %15 : vector<8x128xf32>
    %17 = arith.mulf %11, %16 : vector<8x128xf32>
    %c0_11 = arith.constant 0 : index
    %c0_12 = arith.constant 0 : index
    %18 = vector.load %arg4[%c0_11, %c0_12] : memref<8x1xf32, #tpu.memory_space<vmem>>, vector<8x1xf32>
    %19 = vector.broadcast %18 : vector<8x1xf32> to vector<8x128xf32>
    %20 = arith.mulf %17, %19 : vector<8x128xf32>
    %c0_13 = arith.constant 0 : index
    %c0_14 = arith.constant 0 : index
    %21 = vector.load %arg5[%c0_13, %c0_14] : memref<8x1xf32, #tpu.memory_space<vmem>>, vector<8x1xf32>
    %22 = vector.broadcast %21 : vector<8x1xf32> to vector<8x128xf32>
    %23 = arith.addf %20, %22 : vector<8x128xf32>
    %cst_15 = arith.constant 0.000000e+00 : f32
    %24 = vector.broadcast %cst_15 : f32 to vector<8x128xf32>
    %25 = arith.cmpf oge, %23, %24 : vector<8x128xf32>
    %cst_16 = arith.constant 2.000000e-01 : f32
    %26 = vector.broadcast %cst_16 : f32 to vector<8x128xf32>
    %27 = arith.mulf %26, %23 : vector<8x128xf32>
    %28 = arith.select %25, %23, %27 : vector<8x128xi1>, vector<8x128xf32>
    %29 = arith.addf %28, %8 : vector<8x128xf32>
    %c0_17 = arith.constant 0 : index
    %c0_18 = arith.constant 0 : index
    %c0_19 = arith.constant 0 : index
    %30 = vector.load %arg7[%c0_17, %c0_18, %c0_19] : memref<1x8x128xf32, #tpu.memory_space<vmem>>, vector<1x8x128xf32>
    %31 = vector.shape_cast %30 : vector<1x8x128xf32> to vector<8x128xf32>
    %32 = vector.shape_cast %29 : vector<8x128xf32> to vector<1x8x128xf32>
    tpu.vector_store %arg7[%c0_17, %c0_18, %c0_19], %32 {strides = array<i32>} : memref<1x8x128xf32, #tpu.memory_space<vmem>>, vector<1x8x128xf32>,
    return
  }
  func.func @transform_0(%arg0: i32) -> (i32, i32, i32) {
    %c0_i32 = arith.constant 0 : i32
    %c0_i32_0 = arith.constant 0 : i32
    %c0_i32_1 = arith.constant 0 : i32
    return %arg0, %c0_i32, %c0_i32_0 : i32, i32, i32
  }
  func.func @transform_1(%arg0: i32) -> (i32, i32) {
    %c0_i32 = arith.constant 0 : i32
    %c0_i32_0 = arith.constant 0 : i32
    %c0_i32_1 = arith.constant 0 : i32
    return %c0_i32, %c0_i32_0 : i32, i32
  }
  func.func @transform_2(%arg0: i32) -> (i32, i32) {
    %c0_i32 = arith.constant 0 : i32
    %c0_i32_0 = arith.constant 0 : i32
    %c0_i32_1 = arith.constant 0 : i32
    return %c0_i32, %c0_i32_0 : i32, i32
  }
  func.func @transform_3(%arg0: i32) -> (i32, i32) {
    %c0_i32 = arith.constant 0 : i32
    %c0_i32_0 = arith.constant 0 : i32
    %c0_i32_1 = arith.constant 0 : i32
    return %c0_i32, %c0_i32_0 : i32, i32
  }
  func.func @transform_4(%arg0: i32) -> (i32, i32) {
    %c0_i32 = arith.constant 0 : i32
    %c0_i32_0 = arith.constant 0 : i32
    %c0_i32_1 = arith.constant 0 : i32
    return %c0_i32, %c0_i32_0 : i32, i32
  }
  func.func @transform_5(%arg0: i32) -> (i32, i32) {
    %c0_i32 = arith.constant 0 : i32
    %c0_i32_0 = arith.constant 0 : i32
    %c0_i32_1 = arith.constant 0 : i32
    return %c0_i32, %c0_i32_0 : i32, i32
  }
  func.func @transform_6(%arg0: i32) -> (i32, i32, i32) {
    %c0_i32 = arith.constant 0 : i32
    %c0_i32_0 = arith.constant 0 : i32
    %c0_i32_1 = arith.constant 0 : i32
    return %arg0, %c0_i32, %c0_i32_0 : i32, i32, i32
  }
}

</mosaic_0001>

<bundles_post_ra>
// kernel: tpu_custom_call.1
= control target key start
LH: loop header
LB: loop body
LE: loop exit
PB: predicated region body
PF: predicated region fallthrough
CT: control target
= control target key end

     0   :  { %11 = vsyncpa [#allocation3], 0  ;;  %s740_s0 = inlined_call_operand.vmem [shape: f32[1,36,128], index: 0, kind: input, shape index: {}]   ;;  %s741_s1 = inlined_call_operand.hbm [shape: f32[16,36], index: 1, kind: input, shape index: {}]   ;;  %s742_s2 = inlined_call_operand.vmem [shape: f32[16,1], index: 2, kind: input, shape index: {}]   ;;  %s743_s3 = inlined_call_operand.vmem [shape: f32[8,1], index: 3, kind: input, shape index: {}]   ;;  %s744_s4 = inlined_call_operand.vmem [shape: f32[8,1], index: 4, kind: input, shape index: {}]   ;;  %s745_s5 = inlined_call_operand.vmem [shape: f32[128,128], index: 5, kind: input, shape index: {}]   ;;  %s746_s6 = inlined_call_operand.hbm [shape: f32[1,8,128], index: 6, kind: output, shape index: {}]  }
   0x1   :  { %12 = vsyncpa [#allocation4], 0  ;;  %s580_s21 = smov [#allocation2]   ;;  %s532_s25 = scalar_lea.hbm %s741_s1, 256 }
   0x2   :  { %s20_s22 = sshll.u32 %s580_s21, 4  ;;  %p533_p0 = scmp.ne.s32.totalorder %s741_s1, %s532_s25  ;;  %s21_s22 = int_to_ptr.vmem [resolvable:$true] %s20_s22 }
   0x3   :  { %p536_p1 = scmp.lt.u32.totalorder %s532_s25, %s741_s1 }
   0x5   :  { %p538_p2 = pnand %p536_p1, %p533_p0 }
   0x7   :  { %541 = shalt.err (!%p538_p2)
}
   0x8   :  { %s542_s30 = scalar_lea.vmem %s21_s22, 256  ;;  %p547_p4 = scmp.lt.s32.totalorder %s21_s22, %s21_s22 }
   0x9   :  { %p543_p3 = scmp.ne.s32.totalorder %s21_s22, %s542_s30  ;;  %p548_p5 = scmp.lt.s32.totalorder %s542_s30, %s542_s30 }
   0xb   :  { %p549_p6 = por %p548_p5, %p547_p4 }
   0xd   :  { %p550_p7 = pnand %p549_p6, %p543_p3 }
   0xf   :  { %553 = shalt.err (!%p550_p7)
}
  0x10   :  { %s581_s7 = smov 128   ;;  %s582_s8 = smov 8  }
  0x11   :  { %26 = dma.hbm_to_vmem [thread:$0]  %s741_s1, 256, %s21_s22, [#allocation3], %s581_s7, %s581_s7, %s582_s8  }
  0x12   :  { %576 = dma.done.wait [#allocation3], 256  }
  0x13   :  { %577 = vsyncadd [#allocation3], 4294967040  ;;  %v583_v0 = vmov 0   ;;  %v584_v1 = vmov 0.0|0.0   ;;  %vm57_vm0 = vcmask 293888   ;;  %v38_v2 = vld [vmem:[%s740_s0] sm:$0xff] }
  0x14   :  { %529 = vset.pattern.permute.xlu1 %v583_v0  ;;  %528 = vset.pattern.permute.xlu0 %v583_v0  ;;  %v39_v3 = vld [vmem:[%s740_s0 + $0x8] sm:$0xff]  ;;  %v40_v4 = vld [vmem:[%s740_s0 + $0x10] sm:$0xff]  ;;  %v41_v6 = vld [vmem:[%s740_s0 + $0x18] sm:$0xff]  ;;  %vm64_vm1 = vcmask 1043456   ;;  %vm585_vm2 = vmmov 0   ;;  %v586_v39 = vmov 0.0  }
  0x15   :  { %472 = vmatprep.subr.bf16.mxu1 %v584_v1  ;;  %v464_v5 = vpack.c.bf16 %v39_v3, %v38_v2  ;;  %v43_v7 = vld [vmem:[#allocation2] sm:$0xff]  ;;  %v468_v8 = vpack.c.bf16 %v41_v6, %v40_v4  ;;  %v46_v11 = vld [vmem:[%s742_s2 + $0x8] sm:$0xff]  ;;  %v145_v14 = vld [vmem:[%s745_s5 + $0x10] sm:$0xff]  ;;  %426 = vmatprep.mubr.msk.f32.mxu1 %vm585_vm2, %v586_v39 }
  0x16   :  { %391 = vmatprep.mubr.msk.f32.mxu0 %vm57_vm0, %v43_v7  ;;  %v310_v9 = vld [vmem:[%s744_s4] sm:$0xff]  ;;  %v144_v13 = vld [vmem:[%s745_s5 + $0x8] sm:$0xff]  ;;  %v146_v15 = vld [vmem:[%s745_s5 + $0x18] sm:$0xff] }
  0x17   :  { %v45_v10 = vld [vmem:[%s742_s2] sm:$0xff]  ;;  %465 = vmatprep.subr.bf16.mxu0 %v464_v5  ;;  %313 = vperm.xlu1 %529, %v310_v9   ;;  %v476_v19 = vpack.c.bf16 %v146_v15, %v145_v14  ;;  %v148_v21 = vld [vmem:[%s745_s5 + $0x28] sm:$0xff]  ;;  %v149_v24 = vld [vmem:[%s745_s5 + $0x30] sm:$0xff] }
  0x18   :  { %v143_v12 = vld [vmem:[%s745_s5] sm:$0xff]  ;;  %467 = vmatpush3.bf16.msra.mxu0 %v464_v5  ;;  %49 = vperm.xlu0 %528, %v45_v10   ;;  %v44_v22 = vld [vmem:[#allocation2 + $0x8] sm:$0xff]  ;;  %v150_v25 = vld [vmem:[%s745_s5 + $0x38] sm:$0xff] }
  0x19   :  { %469 = vmatprep.subr.bf16.mxu0 %v468_v8  ;;  %v303_v16 = vld [vmem:[%s743_s3] sm:$0xff]  ;;  %v473_v17 = vpack.c.bf16 %v144_v13, %v143_v12  ;;  %v482_v26 = vpack.c.bf16 %v150_v25, %v149_v24  ;;  %v152_v28 = vld [vmem:[%s745_s5 + $0x48] sm:$0xff]  ;;  %v153_v30 = vld [vmem:[%s745_s5 + $0x50] sm:$0xff] }
  0x1a   :  { %v42_v18 = vld [vmem:[%s740_s0 + $0x20] sm:$0xf]  ;;  %v154_v31 = vld [vmem:[%s745_s5 + $0x58] sm:$0xff]  ;;  %v156_v34 = vld [vmem:[%s745_s5 + $0x68] sm:$0xff] }
  0x1b   :  { %54 = vperm.xlu1 %529, %v46_v11   ;;  %474 = vmatpush3.bf16.msra.mxu1 %v473_v17  ;;  %v147_v20 = vld [vmem:[%s745_s5 + $0x20] sm:$0xff]  ;;  %v488_v32 = vpack.c.bf16 %v154_v31, %v153_v30  ;;  %v157_v36 = vld [vmem:[%s745_s5 + $0x70] sm:$0xff]  ;;  %v158_v37 = vld [vmem:[%s745_s5 + $0x78] sm:$0xff] }
  0x1c   :  { %471 = vmatpush3.bf16.msra.mxu0 %v468_v8  ;;  %306 = vperm.xlu0 %528, %v303_v16   ;;  %v479_v23 = vpack.c.bf16 %v148_v21, %v147_v20  ;;  %v151_v27 = vld [vmem:[%s745_s5 + $0x40] sm:$0xff]  ;;  %v494_v38 = vpack.c.bf16 %v158_v37, %v157_v36 }
  0x1d   :  { %389 = vmatprep.subr.msk.mxu0 %vm64_vm1, %v42_v18  ;;  %475 = vmatprep.subr.bf16.mxu1 %v584_v1  ;;  %v485_v29 = vpack.c.bf16 %v152_v28, %v151_v27  ;;  %v155_v33 = vld [vmem:[%s745_s5 + $0x60] sm:$0xff]  ;;  %s587_s5 = smov [#allocation5]  }
  0x1e   :  { %v491_v35 = vpack.c.bf16 %v156_v34, %v155_v33  ;;  %s328_s30 = sshll.u32 %s587_s5, 4  ;;  %s329_s30 = int_to_ptr.vmem [resolvable:$true] %s328_s30 }
  0x1f   :  { %477 = vmatpush3.bf16.msra.mxu1 %v476_v19  ;;  %s554_s2 = scalar_lea.vmem %s329_s30, 128  ;;  %p559_p9 = scmp.lt.s32.totalorder %s329_s30, %s329_s30 }
  0x20   :  { %390 = vmatpush3.msk.msra.mxu0 %vm64_vm1, %v42_v18  ;;  %478 = vmatprep.subr.bf16.mxu1 %v584_v1  ;;  %p555_p8 = scmp.ne.s32.totalorder %s329_s30, %s554_s2  ;;  %p560_p10 = scmp.lt.s32.totalorder %s554_s2, %s554_s2 }
  0x21   :  { %392 = vmatmul.mubr.msk.f32.vlgmr.msra.gmra.mrb[0].mxu0 %vm57_vm0, %v44_v22  ;;  %496 = vmatprep.subr.bf16.mxu0 %v584_v1 }
  0x22   :  { %498 = vmatpush3.bf16.msra.mxu0 %v473_v17  ;;  %461 = vmatprep.mubr.msk.f32.mxu0 %vm585_vm2, %v586_v39  ;;  %p561_p11 = por %p560_p10, %p559_p9 }
  0x23   :  { %480 = vmatpush3.bf16.msra.mxu1 %v479_v23  ;;  %499 = vmatprep.subr.bf16.mxu0 %v584_v1 }
  0x24   :  { %481 = vmatprep.subr.bf16.mxu1 %v584_v1  ;;  %p562_p12 = pnand %p561_p11, %p555_p8 }
  0x26   :  { %501 = vmatpush3.bf16.msra.mxu0 %v476_v19 }
  0x27   :  { %483 = vmatpush3.bf16.msra.mxu1 %v482_v26  ;;  %502 = vmatprep.subr.bf16.mxu0 %v584_v1 }
  0x28   :  { %484 = vmatprep.subr.bf16.mxu1 %v584_v1 }
  0x2a   :  { %504 = vmatpush3.bf16.msra.mxu0 %v479_v23 }
  0x2b   :  { %486 = vmatpush3.bf16.msra.mxu1 %v485_v29  ;;  %505 = vmatprep.subr.bf16.mxu0 %v584_v1 }
  0x2c   :  { %487 = vmatprep.subr.bf16.mxu1 %v584_v1 }
  0x2e   :  { %507 = vmatpush3.bf16.msra.mxu0 %v482_v26 }
  0x2f   :  { %489 = vmatpush3.bf16.msra.mxu1 %v488_v32  ;;  %508 = vmatprep.subr.bf16.mxu0 %v584_v1 }
  0x30   :  { %490 = vmatprep.subr.bf16.mxu1 %v584_v1 }
  0x32   :  { %510 = vmatpush3.bf16.msra.mxu0 %v485_v29 }
  0x33   :  { %492 = vmatpush3.bf16.msra.mxu1 %v491_v35  ;;  %511 = vmatprep.subr.bf16.mxu0 %v584_v1 }
  0x34   :  { %493 = vmatprep.subr.bf16.mxu1 %v584_v1 }
  0x36   :  { %513 = vmatpush3.bf16.msra.mxu0 %v488_v32 }
  0x37   :  { %514 = vmatprep.subr.bf16.mxu0 %v584_v1  ;;  %495 = vmatpush3.bf16.msra.mxu1 %v494_v38 }
  0x3a   :  { %516 = vmatpush3.bf16.msra.mxu0 %v491_v35 }
  0x3b   :  { %517 = vmatprep.subr.bf16.mxu0 %v584_v1 }
  0x3e   :  { %519 = vmatpush3.bf16.msra.mxu0 %v494_v38 }
  0x96   :  { %v314_v51 = vpop.permute.xlu1 %313 }
  0x97   :  { %v50_v41 = vpop.permute.xlu0 %49 }
  0x9a   :  { %v55_v56 = vpop.permute.xlu1 %54 }
  0x9b   :  { %v307_v54 = vpop.permute.xlu0 %306 }
  0xf4   :  { %v393_v40 = vpop.f32.mrb[0].mxu0 }
  0xf5   :  { %v134_v42 = vpop.f32.mrb[1].mxu0  ;;  %v140_v59 = vadd.f32 %v393_v40, %v55_v56 }
  0xf6   :  { %v135_v43 = vadd.f32 %v134_v42, %v50_v41 }
  0xf8   :  { %427 = vmatmul.mubr.f32.vlgmr.msra.gmra.mrb[0].mxu1 %v135_v43 }
 0x1cb   :  { %v225_v44 = vpop.f32.mrb[0].mxu1 }
 0x1cc   :  { %v229_v45 = vsub.f32 %v135_v43, %v225_v44  ;;  %v428_v46 = vpop.f32.mrb[1].mxu1 }
 0x1ce   :  { %v230_v47 = vmul.f32 %v229_v45, %v229_v45 }
 0x1d0   :  { %462 = vmatmul.mubr.f32.vlgmr.msra.gmra.mrb[2].mxu0 %v230_v47 }
 0x2a3   :  { %v297_v48 = vpop.f32.mrb[2].mxu0 }
 0x2a4   :  { %v298_v49 = vadd.f32 1e-05, %v297_v48  ;;  %v463_v50 = vpop.f32.mrb[3].mxu0 }
 0x2a6   :  { %530 = vrsqrt.f32 %v298_v49 }
 0x2b0   :  { %v531_v52 = vpop.eup %530 }
 0x2b1   :  { %v302_v53 = vmul.f32 %v531_v52, %v229_v45 }
 0x2b3   :  { %v309_v55 = vmul.f32 %v307_v54, %v302_v53 }
 0x2b5   :  { %v316_v57 = vadd.f32 %v314_v51, %v309_v55 }
 0x2b7   :  { %vm317_vm3 = vcmp.ge.f32.partialorder %v316_v57, 0.0  ;;  %v318_v58 = vmul.f32 0.2, %v316_v57 }
 0x2b9   :  { %v319_v60 = vsel %vm317_vm3, %v316_v57, %v318_v58 }
 0x2ba   :  { %v320_v61 = vadd.f32 %v319_v60, %v140_v59 }
 0x2bc   :  { %321 = vst [vmem:[#allocation5] sm:$0xff] %v320_v61 }
 0x2bd   :  { %565 = shalt.err (!%p562_p12)
}
 0x2be   :  { %s566_s9 = scalar_lea.hbm %s746_s6, 128 }
 0x2bf   :  { %p567_p13 = scmp.ne.s32.totalorder %s746_s6, %s566_s9  ;;  %p570_p0 = scmp.lt.u32.totalorder %s566_s9, %s746_s6 }
 0x2c1   :  { %p572_p1 = pnand %p570_p0, %p567_p13 }
 0x2c3   :  { %575 = shalt.err (!%p572_p1)
}
 0x2c4   :  { %331 = dma.vmem_to_hbm [thread:$0]  %s329_s30, 128, %s746_s6, [#allocation4]  }
 0x2c5   :  { %578 = dma.done.wait [#allocation4], 128  }
 0x2c6   :  { %579 = vsyncadd [#allocation4], 4294967168 }
 0x2c7   :  { %335 = vsyncpa [#allocation3], 1 }
 0x2c8   :  { %336 = vsyncpa [#allocation4], 1 }

</bundles_post_ra>
